<compile_context>
chip_gen: v5e
topology: v5e:2x2
jax: 0.10.0
libtpu: 0.0.40
codegen_flags: <defaults>
</compile_context>

<pallas_src>
import functools

import jax
import jax.numpy as jnp
from jax.experimental import pallas as pl
from jax.experimental.pallas import tpu as pltpu


def _round_up(v, m):
    return (v + m - 1) // m * m


def _default_vmem_limit_bytes():
    # Leave ~25% headroom for compiler-internal scratch + the 2-deep pipeline.
    # (v7x: 64 MiB physical -> ~48 MiB; v5e/v6e: 128 MiB -> ~96 MiB.)
    try:
        cap = pltpu.get_tpu_info().vmem_capacity_bytes
    except Exception:
        cap = 64 * 1024 * 1024
    return int(cap) * 3 // 4


def _attn_agg_kernel(idx_ref, x_ref, wf_ref, bf_ref, w2_ref, b2_ref,
                     out_ref, m_scr, d_scr, acc_scr, *, hid_pad):
    """One (segment-block, node-block) step of the streaming segment softmax."""
    nb = pl.program_id(1)
    n_node_blocks = pl.num_programs(1)

    B = m_scr.shape[0]          # segments handled by this segment block
    tile_n = x_ref.shape[1]     # nodes in this node block (lane axis)

    @pl.when(nb == 0)
    def _init():
        m_scr[...] = jnp.full(m_scr.shape, -1e30, m_scr.dtype)
        d_scr[...] = jnp.zeros(d_scr.shape, d_scr.dtype)
        acc_scr[...] = jnp.zeros(acc_scr.shape, acc_scr.dtype)

    # ---- fused [gate-hidden ; transform] matmul (bf16 operands, f32 accum)
    hw = jnp.dot(wf_ref[...], x_ref[...],
                 preferred_element_type=jnp.float32)        # [hid_pad+out_pad, TILE_N]
    hw = jnp.maximum(hw + bf_ref[...], 0.0)                 # bias + ReLU (Dropout = id)
    h = hw[:hid_pad]                                        # [hid_pad, TILE_N]
    t = hw[hid_pad:]                                        # [out_pad, TILE_N]

    # gate: degenerate 1-wide matmul -> VPU multiply + sublane reduce
    gate = jnp.sum(h * w2_ref[...], axis=0, keepdims=True) + b2_ref[...]   # [1, TILE_N]

    # ---- membership mask: this block's segments on sublanes, nodes on lanes
    seg0 = pl.program_id(0) * B
    seg = jax.lax.broadcasted_iota(jnp.int32, (B, tile_n), 0) + seg0
    member = seg == idx_ref[...]                            # [B, TILE_N] (pad idx = -1)

    # ---- online segment softmax update
    blk_max = jnp.max(jnp.where(member, gate, -1e30), axis=1, keepdims=True)  # [B,1]
    m_old = m_scr[...]
    m_new = jnp.maximum(m_old, blk_max)
    scale = jnp.exp(m_old - m_new)                                            # [B,1]

    node_max = jnp.sum(jnp.where(member, m_new, 0.0), axis=0, keepdims=True)  # [1,TILE_N]
    # member columns always satisfy gate <= node_max; clamping keeps non-member
    # (and padded) columns from exp-overflowing before they are masked out.
    e = jnp.exp(jnp.minimum(gate - node_max, 0.0))                            # [1,TILE_N]
    ew = jnp.where(member, e, 0.0)                                            # [B,TILE_N]

    d_scr[...] = d_scr[...] * scale + jnp.sum(ew, axis=1, keepdims=True)

    # weighted segment sum on the MXU (A @ B^T form, native, no transpose):
    #   acc[b, o] += sum_n ew[b, n] * t[o, n]
    acc_blk = jax.lax.dot_general(
        ew.astype(jnp.bfloat16), t.astype(jnp.bfloat16),
        (((1,), (1,)), ((), ())), preferred_element_type=jnp.float32)         # [B, out_pad]
    acc_scr[...] = acc_scr[...] * scale + acc_blk
    m_scr[...] = m_new

    @pl.when(nb == n_node_blocks - 1)
    def _finalize():
        inv = pl.reciprocal(d_scr[...] + 1e-16, approx=True)                  # [B,1]
        out_ref[...] = (acc_scr[...] * inv).astype(out_ref.dtype)


@functools.partial(jax.jit, static_argnames=("dim_size", "tile_n", "seg_tile"))
def attentional_graph_aggregation(x, index, params, dim_size, tile_n=1024, seg_tile=None):
    """x: [N, D] f32, index: [N] int -> [dim_size, O] f32 (eval-mode forward)."""
    N, D = x.shape
    hid = params["w1"].shape[1]
    out_ch = params["wt"].shape[1]

    hid_pad = _round_up(hid, 8)                 # sublane-aligned slice boundary
    out_pad = _round_up(max(out_ch, 1), 128)    # lane-dense accumulator / store

    # ---- node tiling (reduction axis, last in grid)
    assert tile_n % 128 == 0, "tile_n must be a multiple of 128"
    tile_n = min(tile_n, _round_up(N, 128))
    num_node_blocks = _round_up(N, tile_n) // tile_n
    n_pad = num_node_blocks * tile_n

    # ---- segment tiling (leading "parallel" axis; caps [B, TILE_N] pressure)
    if seg_tile is None:
        seg_tile = min(_round_up(dim_size, 8), 128)
    assert seg_tile % 8 == 0, "seg_tile must be a multiple of 8"
    num_seg_blocks = _round_up(dim_size, seg_tile) // seg_tile

    # ---- activations: bf16 cast FIRST, then feature-major (nodes on lanes)
    x_t = jnp.pad(x.astype(jnp.bfloat16), ((0, n_pad - N), (0, 0))).T        # [D, n_pad]
    idx_row = jnp.pad(index.astype(jnp.int32), (0, n_pad - N),
                      constant_values=-1).reshape(1, n_pad)                  # pad -> no segment

    # ---- fused weights: [W1^T ; Wt^T] -> one MXU pass per node block
    wf = jnp.zeros((hid_pad + out_pad, D), jnp.bfloat16)
    wf = wf.at[:hid].set(params["w1"].T.astype(jnp.bfloat16))
    wf = wf.at[hid_pad:hid_pad + out_ch].set(params["wt"].T.astype(jnp.bfloat16))
    bf = jnp.zeros((hid_pad + out_pad, 1), jnp.float32)
    bf = bf.at[:hid, 0].set(params["b1"].reshape(-1))
    bf = bf.at[hid_pad:hid_pad + out_ch, 0].set(params["bt"].reshape(-1))
    w2 = jnp.zeros((hid_pad, 1), jnp.float32).at[:hid, 0].set(params["w2"].reshape(-1))
    b2 = params["b2"].reshape(1, 1).astype(jnp.float32)

    kernel = functools.partial(_attn_agg_kernel, hid_pad=hid_pad)

    out_full = pl.pallas_call(
        kernel,
        out_shape=jax.ShapeDtypeStruct((num_seg_blocks * seg_tile, out_pad), x.dtype),
        grid_spec=pltpu.PrefetchScalarGridSpec(
            num_scalar_prefetch=0,
            grid=(num_seg_blocks, num_node_blocks),
            in_specs=[
                pl.BlockSpec((1, tile_n), lambda s, i: (0, i)),              # index tile
                pl.BlockSpec((D, tile_n), lambda s, i: (0, i)),              # x^T tile (bf16)
                pl.BlockSpec((hid_pad + out_pad, D), lambda s, i: (0, 0)),   # fused W (resident)
                pl.BlockSpec((hid_pad + out_pad, 1), lambda s, i: (0, 0)),   # fused bias
                pl.BlockSpec((hid_pad, 1), lambda s, i: (0, 0)),             # W2 column
                pl.BlockSpec((1, 1), lambda s, i: (0, 0)),                   # b2 scalar
            ],
            out_specs=pl.BlockSpec((seg_tile, out_pad), lambda s, i: (s, 0)),
            scratch_shapes=[
                pltpu.VMEM((seg_tile, 1), jnp.float32),        # running segment max
                pltpu.VMEM((seg_tile, 1), jnp.float32),        # running segment exp-sum
                pltpu.VMEM((seg_tile, out_pad), jnp.float32),  # unnormalized accumulator
            ],
        ),
        compiler_params=pltpu.CompilerParams(
            dimension_semantics=("parallel", "arbitrary"),
            vmem_limit_bytes=_default_vmem_limit_bytes(),
        ),
    )(idx_row, x_t, wf, bf, w2, b2)

    return out_full[:dim_size, :out_ch]


def init_params(key, in_channels, out_channels):
    """Deterministic init mimicking torch.nn.Linear default U(-1/sqrt(fan_in), ...)."""
    hid = in_channels // 2
    ks = jax.random.split(key, 6)

    def lin(kw, kb, fan_in, fan_out):
        bound = 1.0 / jnp.sqrt(fan_in)
        w = jax.random.uniform(kw, (fan_in, fan_out), jnp.float32, -bound, bound)
        b = jax.random.uniform(kb, (1, fan_out), jnp.float32, -bound, bound)
        return w, b

    w1, b1 = lin(ks[0], ks[1], in_channels, hid)
    w2, b2 = lin(ks[2], ks[3], hid, 1)
    wt, bt = lin(ks[4], ks[5], in_channels, out_channels)
    return {"w1": w1, "b1": b1, "w2": w2, "b2": b2, "wt": wt, "bt": bt}


def _reference(x, index, params, dim_size):
    """Pure-JAX f32 reference of AttentionalAggregation forward (eval mode)."""
    h = jnp.maximum(x @ params["w1"] + params["b1"], 0.0)
    gate = h @ params["w2"] + params["b2"]                     # [N, 1]
    t = jnp.maximum(x @ params["wt"] + params["bt"], 0.0)      # [N, O]
    g = gate[:, 0]
    seg_max = jax.ops.segment_max(g, index, num_segments=dim_size)
    e = jnp.exp(g - seg_max[index])
    seg_sum = jax.ops.segment_sum(e, index, num_segments=dim_size)
    alpha = e / (seg_sum[index] + 1e-16)
    return jax.ops.segment_sum(alpha[:, None] * t, index, num_segments=dim_size)


if __name__ == "__main__":
    in_channels, out_channels = 32, 16
    num_nodes, dim_size = 300, 4        # 3 node blocks with tile_n=128

    key = jax.random.PRNGKey(0)
    k_param, k_x, k_idx = jax.random.split(key, 3)

    params = init_params(k_param, in_channels, out_channels)
    x = jax.random.normal(k_x, (num_nodes, in_channels), jnp.float32)
    index = jax.random.randint(k_idx, (num_nodes,), 0, dim_size, jnp.int32)

    out = attentional_graph_aggregation(x, index, params, dim_size, tile_n=128)
    out = jax.block_until_ready(out)

    ref = _reference(x, index, params, dim_size)
    assert out.shape == (dim_size, out_channels)
    # bf16 MXU operands (f32 accumulation) vs an f32 reference -> bf16 tolerance.
    assert jnp.allclose(out, ref, atol=5e-2, rtol=5e-2), "mismatch vs reference"

    print("KERNEL_OK")
</pallas_src>

<mosaic_0001>
module attributes {stable_mosaic.version = 11 : i64} {
  func.func @_attn_agg_kernel(%arg0: i32, %arg1: i32, %arg2: memref<1x128xi32, #tpu.memory_space<vmem>>, %arg3: memref<32x128xbf16, #tpu.memory_space<vmem>>, %arg4: memref<144x32xbf16, #tpu.memory_space<vmem>>, %arg5: memref<144x1xf32, #tpu.memory_space<vmem>>, %arg6: memref<16x1xf32, #tpu.memory_space<vmem>>, %arg7: memref<1x1xf32, #tpu.memory_space<vmem>>, %arg8: memref<8x128xf32, #tpu.memory_space<vmem>>, %arg9: memref<8x1xf32, #tpu.memory_space<vmem>>, %arg10: memref<8x1xf32, #tpu.memory_space<vmem>>, %arg11: memref<8x128xf32, #tpu.memory_space<vmem>>) attributes {dimension_semantics = [#tpu.dimension_semantics<parallel>, #tpu.dimension_semantics<arbitrary>], iteration_bounds = array<i64: 1, 3>, scalar_prefetch = 0 : i64, scratch_operands = 3 : i64, tpu.core_type = #tpu.core_type<tc>, window_params = [{transform_indices = @transform_0, window_bounds = array<i64: 1, 128>}, {transform_indices = @transform_1, window_bounds = array<i64: 32, 128>}, {pipeline_mode = #tpu.pipeline_mode<synchronous>, transform_indices = @transform_2, window_bounds = array<i64: 144, 32>}, {pipeline_mode = #tpu.pipeline_mode<synchronous>, transform_indices = @transform_3, window_bounds = array<i64: 144, 1>}, {pipeline_mode = #tpu.pipeline_mode<synchronous>, transform_indices = @transform_4, window_bounds = array<i64: 16, 1>}, {pipeline_mode = #tpu.pipeline_mode<synchronous>, transform_indices = @transform_5, window_bounds = array<i64: 1, 1>}, {transform_indices = @transform_6, window_bounds = array<i64: 8, 128>}]} {
    %c0_i32 = arith.constant 0 : i32
    %0 = arith.cmpi eq, %arg1, %c0_i32 : i32
    %1 = arith.extui %0 : i1 to i32
    %c0_i32_0 = arith.constant 0 : i32
    %2 = arith.cmpi ne, %1, %c0_i32_0 : i32
    scf.if %2 {
      %cst_35 = arith.constant -1.000000e+30 : f32
      %70 = vector.broadcast %cst_35 : f32 to vector<8x1xf32>
      %c0_36 = arith.constant 0 : index
      %c0_37 = arith.constant 0 : index
      %71 = vector.load %arg9[%c0_36, %c0_37] : memref<8x1xf32, #tpu.memory_space<vmem>>, vector<8x1xf32>
      tpu.vector_store %arg9[%c0_36, %c0_37], %70 {strides = array<i32>} : memref<8x1xf32, #tpu.memory_space<vmem>>, vector<8x1xf32>,
      %cst_38 = arith.constant 0.000000e+00 : f32
      %72 = vector.broadcast %cst_38 : f32 to vector<8x1xf32>
      %c0_39 = arith.constant 0 : index
      %c0_40 = arith.constant 0 : index
      %73 = vector.load %arg10[%c0_39, %c0_40] : memref<8x1xf32, #tpu.memory_space<vmem>>, vector<8x1xf32>
      tpu.vector_store %arg10[%c0_39, %c0_40], %72 {strides = array<i32>} : memref<8x1xf32, #tpu.memory_space<vmem>>, vector<8x1xf32>,
      %cst_41 = arith.constant 0.000000e+00 : f32
      %74 = vector.broadcast %cst_41 : f32 to vector<8x128xf32>
      %c0_42 = arith.constant 0 : index
      %c0_43 = arith.constant 0 : index
      %75 = vector.load %arg11[%c0_42, %c0_43] : memref<8x128xf32, #tpu.memory_space<vmem>>, vector<8x128xf32>
      tpu.vector_store %arg11[%c0_42, %c0_43], %74 {strides = array<i32>} : memref<8x128xf32, #tpu.memory_space<vmem>>, vector<8x128xf32>,
    } else {
    }
    %c0 = arith.constant 0 : index
    %c0_1 = arith.constant 0 : index
    %3 = vector.load %arg4[%c0, %c0_1] : memref<144x32xbf16, #tpu.memory_space<vmem>>, vector<144x32xbf16>
    %c0_2 = arith.constant 0 : index
    %c0_3 = arith.constant 0 : index
    %4 = vector.load %arg3[%c0_2, %c0_3] : memref<32x128xbf16, #tpu.memory_space<vmem>>, vector<32x128xbf16>
    %cst = arith.constant dense<0.000000e+00> : vector<144x128xf32>
    %5 = tpu.matmul %3, %4, %cst {dimension_numbers = #tpu.dot_dimension_numbers<[1], [0], [0], [1], [0, 0, 1, 1], [], []>} : vector<144x32xbf16>, vector<32x128xbf16>, vector<144x128xf32> -> vector<144x128xf32>
    %c0_4 = arith.constant 0 : index
    %c0_5 = arith.constant 0 : index
    %6 = vector.load %arg5[%c0_4, %c0_5] : memref<144x1xf32, #tpu.memory_space<vmem>>, vector<144x1xf32>
    %7 = vector.broadcast %6 : vector<144x1xf32> to vector<144x128xf32>
    %8 = arith.addf %5, %7 : vector<144x128xf32>
    %cst_6 = arith.constant 0.000000e+00 : f32
    %9 = vector.broadcast %cst_6 : f32 to vector<144x128xf32>
    %10 = arith.maximumf %8, %9 : vector<144x128xf32>
    %11 = vector.extract_strided_slice %10 {offsets = [0, 0], sizes = [16, 128], strides = [1, 1]} : vector<144x128xf32> to vector<16x128xf32>
    %12 = vector.extract_strided_slice %10 {offsets = [16, 0], sizes = [128, 128], strides = [1, 1]} : vector<144x128xf32> to vector<128x128xf32>
    %c0_7 = arith.constant 0 : index
    %c0_8 = arith.constant 0 : index
    %13 = vector.load %arg6[%c0_7, %c0_8] : memref<16x1xf32, #tpu.memory_space<vmem>>, vector<16x1xf32>
    %14 = vector.broadcast %13 : vector<16x1xf32> to vector<16x128xf32>
    %15 = arith.mulf %11, %14 : vector<16x128xf32>
    %cst_9 = arith.constant dense<0.000000e+00> : vector<128xf32>
    %16 = vector.multi_reduction <add>, %15, %cst_9 [0] : vector<16x128xf32> to vector<128xf32>
    %17 = vector.shape_cast %16 : vector<128xf32> to vector<1x128xf32>
    %c0_10 = arith.constant 0 : index
    %c0_11 = arith.constant 0 : index
    %18 = vector.load %arg7[%c0_10, %c0_11] : memref<1x1xf32, #tpu.memory_space<vmem>>, vector<1x1xf32>
    %19 = vector.broadcast %18 : vector<1x1xf32> to vector<1x128xf32>
    %20 = arith.addf %17, %19 : vector<1x128xf32>
    %c8_i32 = arith.constant 8 : i32
    %21 = arith.muli %arg0, %c8_i32 : i32
    %22 = tpu.iota {dimensions = array<i32: 0>} : vector<8x128xi32>
    %23 = vector.broadcast %21 : i32 to vector<8x128xi32>
    %24 = arith.addi %22, %23 : vector<8x128xi32>
    %c0_12 = arith.constant 0 : index
    %c0_13 = arith.constant 0 : index
    %25 = vector.load %arg2[%c0_12, %c0_13] : memref<1x128xi32, #tpu.memory_space<vmem>>, vector<1x128xi32>
    %26 = vector.broadcast %25 : vector<1x128xi32> to vector<8x128xi32>
    %27 = arith.cmpi eq, %24, %26 : vector<8x128xi32>
    %cst_14 = arith.constant -1.000000e+30 : f32
    %28 = vector.shape_cast %20 : vector<1x128xf32> to vector<1x128xf32>
    %29 = vector.broadcast %28 : vector<1x128xf32> to vector<8x128xf32>
    %30 = vector.broadcast %cst_14 : f32 to vector<8x128xf32>
    %31 = arith.select %27, %29, %30 : vector<8x128xi1>, vector<8x128xf32>
    %cst_15 = arith.constant dense<0xFF800000> : vector<8xf32>
    %32 = vector.multi_reduction <maximumf>, %31, %cst_15 [1] : vector<8x128xf32> to vector<8xf32>
    %33 = vector.shape_cast %32 : vector<8xf32> to vector<8x1xf32>
    %c0_16 = arith.constant 0 : index
    %c0_17 = arith.constant 0 : index
    %34 = vector.load %arg9[%c0_16, %c0_17] : memref<8x1xf32, #tpu.memory_space<vmem>>, vector<8x1xf32>
    %35 = arith.maximumf %34, %33 : vector<8x1xf32>
    %36 = arith.subf %34, %35 : vector<8x1xf32>
    %37 = math.exp %36 : vector<8x1xf32>
    %cst_18 = arith.constant 0.000000e+00 : f32
    %38 = vector.shape_cast %35 : vector<8x1xf32> to vector<8x1xf32>
    %39 = vector.broadcast %38 : vector<8x1xf32> to vector<8x128xf32>
    %40 = vector.broadcast %cst_18 : f32 to vector<8x128xf32>
    %41 = arith.select %27, %39, %40 : vector<8x128xi1>, vector<8x128xf32>
    %cst_19 = arith.constant dense<0.000000e+00> : vector<128xf32>
    %42 = vector.multi_reduction <add>, %41, %cst_19 [0] : vector<8x128xf32> to vector<128xf32>
    %43 = vector.shape_cast %42 : vector<128xf32> to vector<1x128xf32>
    %44 = arith.subf %20, %43 : vector<1x128xf32>
    %cst_20 = arith.constant 0.000000e+00 : f32
    %45 = vector.broadcast %cst_20 : f32 to vector<1x128xf32>
    %46 = arith.minimumf %44, %45 : vector<1x128xf32>
    %47 = math.exp %46 : vector<1x128xf32>
    %cst_21 = arith.constant 0.000000e+00 : f32
    %48 = vector.shape_cast %47 : vector<1x128xf32> to vector<1x128xf32>
    %49 = vector.broadcast %48 : vector<1x128xf32> to vector<8x128xf32>
    %50 = vector.broadcast %cst_21 : f32 to vector<8x128xf32>
    %51 = arith.select %27, %49, %50 : vector<8x128xi1>, vector<8x128xf32>
    %c0_22 = arith.constant 0 : index
    %c0_23 = arith.constant 0 : index
    %52 = vector.load %arg10[%c0_22, %c0_23] : memref<8x1xf32, #tpu.memory_space<vmem>>, vector<8x1xf32>
    %53 = arith.mulf %52, %37 : vector<8x1xf32>
    %cst_24 = arith.constant dense<0.000000e+00> : vector<8xf32>
    %54 = vector.multi_reduction <add>, %51, %cst_24 [1] : vector<8x128xf32> to vector<8xf32>
    %55 = vector.shape_cast %54 : vector<8xf32> to vector<8x1xf32>
    %56 = arith.addf %53, %55 : vector<8x1xf32>
    %c0_25 = arith.constant 0 : index
    %c0_26 = arith.constant 0 : index
    %57 = vector.load %arg10[%c0_25, %c0_26] : memref<8x1xf32, #tpu.memory_space<vmem>>, vector<8x1xf32>
    tpu.vector_store %arg10[%c0_25, %c0_26], %56 {strides = array<i32>} : memref<8x1xf32, #tpu.memory_space<vmem>>, vector<8x1xf32>,
    %58 = arith.truncf %51 : vector<8x128xf32> to vector<8x128xbf16>
    %59 = arith.truncf %12 : vector<128x128xf32> to vector<128x128xbf16>
    %cst_27 = arith.constant dense<0.000000e+00> : vector<8x128xf32>
    %60 = tpu.matmul %58, %59, %cst_27 {dimension_numbers = #tpu.dot_dimension_numbers<[1], [1], [0], [0], [0, 0, 1, 0], [], []>} : vector<8x128xbf16>, vector<128x128xbf16>, vector<8x128xf32> -> vector<8x128xf32>
    %c0_28 = arith.constant 0 : index
    %c0_29 = arith.constant 0 : index
    %61 = vector.load %arg11[%c0_28, %c0_29] : memref<8x128xf32, #tpu.memory_space<vmem>>, vector<8x128xf32>
    %62 = vector.broadcast %37 : vector<8x1xf32> to vector<8x128xf32>
    %63 = arith.mulf %61, %62 : vector<8x128xf32>
    %64 = arith.addf %63, %60 : vector<8x128xf32>
    %c0_30 = arith.constant 0 : index
    %c0_31 = arith.constant 0 : index
    %65 = vector.load %arg11[%c0_30, %c0_31] : memref<8x128xf32, #tpu.memory_space<vmem>>, vector<8x128xf32>
    tpu.vector_store %arg11[%c0_30, %c0_31], %64 {strides = array<i32>} : memref<8x128xf32, #tpu.memory_space<vmem>>, vector<8x128xf32>,
    %c0_32 = arith.constant 0 : index
    %c0_33 = arith.constant 0 : index
    %66 = vector.load %arg9[%c0_32, %c0_33] : memref<8x1xf32, #tpu.memory_space<vmem>>, vector<8x1xf32>
    tpu.vector_store %arg9[%c0_32, %c0_33], %35 {strides = array<i32>} : memref<8x1xf32, #tpu.memory_space<vmem>>, vector<8x1xf32>,
    %c2_i32 = arith.constant 2 : i32
    %67 = arith.cmpi eq, %arg1, %c2_i32 : i32
    %68 = arith.extui %67 : i1 to i32
    %c0_i32_34 = arith.constant 0 : i32
    %69 = arith.cmpi ne, %68, %c0_i32_34 : i32
    scf.if %69 {
      %c0_35 = arith.constant 0 : index
      %c0_36 = arith.constant 0 : index
      %70 = vector.load %arg10[%c0_35, %c0_36] : memref<8x1xf32, #tpu.memory_space<vmem>>, vector<8x1xf32>
      %cst_37 = arith.constant 1.000000e-16 : f32
      %71 = vector.broadcast %cst_37 : f32 to vector<8x1xf32>
      %72 = arith.addf %70, %71 : vector<8x1xf32>
      %73 = tpu.reciprocal %72 {approx = true} : vector<8x1xf32> -> vector<8x1xf32>
      %c0_38 = arith.constant 0 : index
      %c0_39 = arith.constant 0 : index
      %74 = vector.load %arg11[%c0_38, %c0_39] : memref<8x128xf32, #tpu.memory_space<vmem>>, vector<8x128xf32>
      %75 = vector.broadcast %73 : vector<8x1xf32> to vector<8x128xf32>
      %76 = arith.mulf %74, %75 : vector<8x128xf32>
      %c0_40 = arith.constant 0 : index
      %c0_41 = arith.constant 0 : index
      %77 = vector.load %arg8[%c0_40, %c0_41] : memref<8x128xf32, #tpu.memory_space<vmem>>, vector<8x128xf32>
      tpu.vector_store %arg8[%c0_40, %c0_41], %76 {strides = array<i32>} : memref<8x128xf32, #tpu.memory_space<vmem>>, vector<8x128xf32>,
    } else {
    }
    return
  }
  func.func @transform_0(%arg0: i32, %arg1: i32) -> (i32, i32) {
    %c0_i32 = arith.constant 0 : i32
    %c0_i32_0 = arith.constant 0 : i32
    return %c0_i32, %arg1 : i32, i32
  }
  func.func @transform_1(%arg0: i32, %arg1: i32) -> (i32, i32) {
    %c0_i32 = arith.constant 0 : i32
    %c0_i32_0 = arith.constant 0 : i32
    return %c0_i32, %arg1 : i32, i32
  }
  func.func @transform_2(%arg0: i32, %arg1: i32) -> (i32, i32) {
    %c0_i32 = arith.constant 0 : i32
    %c0_i32_0 = arith.constant 0 : i32
    %c0_i32_1 = arith.constant 0 : i32
    return %c0_i32, %c0_i32_0 : i32, i32
  }
  func.func @transform_3(%arg0: i32, %arg1: i32) -> (i32, i32) {
    %c0_i32 = arith.constant 0 : i32
    %c0_i32_0 = arith.constant 0 : i32
    %c0_i32_1 = arith.constant 0 : i32
    return %c0_i32, %c0_i32_0 : i32, i32
  }
  func.func @transform_4(%arg0: i32, %arg1: i32) -> (i32, i32) {
    %c0_i32 = arith.constant 0 : i32
    %c0_i32_0 = arith.constant 0 : i32
    %c0_i32_1 = arith.constant 0 : i32
    return %c0_i32, %c0_i32_0 : i32, i32
  }
  func.func @transform_5(%arg0: i32, %arg1: i32) -> (i32, i32) {
    %c0_i32 = arith.constant 0 : i32
    %c0_i32_0 = arith.constant 0 : i32
    %c0_i32_1 = arith.constant 0 : i32
    return %c0_i32, %c0_i32_0 : i32, i32
  }
  func.func @transform_6(%arg0: i32, %arg1: i32) -> (i32, i32) {
    %c0_i32 = arith.constant 0 : i32
    %c0_i32_0 = arith.constant 0 : i32
    return %arg0, %c0_i32 : i32, i32
  }
}

</mosaic_0001>

<bundles_post_ra>
// kernel: attentional_graph_aggregation.1
= control target key start
LH: loop header
LB: loop body
LE: loop exit
PB: predicated region body
PF: predicated region fallthrough
CT: control target
= control target key end

     0   :  { %s1233_s0 = inlined_call_operand.vmem [shape: s32[1,384], index: 0, kind: input, shape index: {}]   ;;  %s1234_s1 = inlined_call_operand.vmem [shape: bf16[32,384], index: 1, kind: input, shape index: {}]   ;;  %s1235_s2 = inlined_call_operand.vmem [shape: bf16[144,32], index: 2, kind: input, shape index: {}]   ;;  %s1236_s3 = inlined_call_operand.vmem [shape: f32[144,1], index: 3, kind: input, shape index: {}]   ;;  %s1237_s4 = inlined_call_operand.vmem [shape: f32[16,1], index: 4, kind: input, shape index: {}]   ;;  %s1238_s5 = inlined_call_operand.<no memory space> [shape: f32[1,1], index: 5, kind: input, shape index: {}]   ;;  %s1239_s6 = inlined_call_operand.vmem [shape: f32[8,128], index: 6, kind: output, shape index: {}]  }
   0x1   :  { %v11_v0 = vstv %s1238_s5 }
   0x2   :  { %12 = vst [vmem:[#allocation5] sm:$0x1] %v11_v0 }
   0x3   :  { %s1039_s23 = smov 0   ;;  %s1041_s24 = smov 0  }
   0x4   :  { %s1043_s25 = smov 0   ;;  %s1045_s26 = smov 0  }
   0x5   :  { %s1047_s27 = smov 0  }
   0x6 LB: > { %s27_s5 = sadd.s32 1, %s991_s26  ;;  %p70_p1 = scmp.ne.s32.totalorder %s983_s24, %s979_s23  ;;  %s995_s27 = sphi %s1047_s27, %s18_s27   ;;  %s991_s26 = sphi %s1045_s26, %s1245_s26   ;;  %s987_s25 = sphi %s1043_s25, %s1244_s25   ;;  %s983_s24 = sphi %s1041_s24, %s1243_s24   ;;  %s979_s23 = sphi %s1039_s23, %s1242_s23  }
   0x7   : > { %p28_p0 = scmp.ge.s32.totalorder %s27_s5, 3  ;;  %p71_p2 = scmp.eq.s32.totalorder %s995_s27, 0 }
   0x8   : > { %s63_s29 = sadd.s32 1, %s983_s24  ;;  %p821_p5 = scmp.ge.s32.totalorder %s995_s27, 3 }
   0x9   : > { %s1247_s5 = smov (%p28_p0, %s27_s5), 0  ;;  %p72_p3 = por %p71_p2, %p70_p1 }
   0xa   : > { %s60_s28 = ssub.s32 %s991_s26, %s1247_s5  ;;  %218 = sbr.rel (%p821_p5) target bundleno = 23 (0x17), region = 32 }
   0xb   : > { %p61_p4 = scmp.eq.s32.totalorder %s60_s28, 0 }
   0xd   : > { %s1074_s30 = scalar_select %p61_p4, %s983_s24, %s63_s29  }
   0xf   : > { %227 = sbr.rel (!%p72_p3) target bundleno = 23 (0x17), region = 40  ;;  %s229_s7 = sand.u32 (%p72_p3), 1, %s983_s24  }
  0x10   : > { %s823_s8 = sshll.u32 (%p72_p3), %s991_s26, 2  ;;  %s822_s9 = sshll.u32 (%p72_p3), %s229_s7, 4 }
  0x11   : > { %s233_s12 = scalar_lea.vmem (%p72_p3), %s1234_s1, %s823_s8  ;;  %s231_s13 = scalar_lea.vmem (%p72_p3), [#allocation6], %s822_s9 }
  0x12   : > { %v250_v1 = vld [vmem:[%s233_s12] sm:$0xf] (%p72_p3)  ;;  %v252_v2 = vld [vmem:[%s233_s12 + $0xc] sm:$0xf] (%p72_p3)  ;;  %v254_v3 = vld [vmem:[%s233_s12 + $0x18] sm:$0xf] (%p72_p3) }
  0x13   : > { %251 = vst [vmem:[%s231_s13] sm:$0xf] (%p72_p3), %v250_v1  ;;  %v256_v4 = vld [vmem:[%s233_s12 + $0x24] sm:$0xf] (%p72_p3) }
  0x14   : > { %253 = vst [vmem:[%s231_s13 + $0x4] sm:$0xf] %v252_v2 }
  0x15   : > { %255 = vst [vmem:[%s231_s13 + $0x8] sm:$0xf] %v254_v3 }
  0x16   : > { %257 = vst [vmem:[%s231_s13 + $0xc] sm:$0xf] %v256_v4 }
  0x17 PF: > { %p824_p6 = scmp.ge.s32.totalorder %s995_s27, 1  ;;  %p288_p7 = scmp.lt.s32.totalorder %s995_s27, 4 }
  0x19   : > { %p289_p8 = pnand %p824_p6, %p288_p7 }
  0x1a   : > { %s295_s14 = sand.u32 (!%p289_p8), 1, %s979_s23   ;;  %p326_p9 = scmp.lt.s32.totalorder (!%p289_p8), %s987_s25, 2 }
  0x1b   : > { %292 = sbr.rel (%p289_p8) target bundleno = 734 (0x2de), region = 81  ;;  %s825_s15 = sshll.u32 (!%p289_p8), %s295_s14, 4 }
  0x1c   : > { %s297_s20 = scalar_lea.vmem (!%p289_p8), [#allocation6], %s825_s15  ;;  %p826_p10 = scmp.ne.s32.totalorder (!%p289_p8), %s987_s25, 0 }
  0x20   : > { %s1087_s16 = scalar_select %p326_p9, %s987_s25, 2 }
  0x21   : > { %337 = sbr.rel (%p826_p10) target bundleno = 42 (0x2a), region = 89 }
  0x22   : > { %s328_s19 = scalar_lea.vmem %s1233_s0, %s1087_s16 }
  0x26   : > { %vm338_vm0 = vcmask 7168   ;;  %v997_v5 = vmov -1e+30   ;;  %v998_v6 = vmov 0.0  }
  0x27   : > { %339 = vst.msk [vmem:[#allocation2] sm:$0xff] %vm338_vm0, %v997_v5 }
  0x28   : > { %340 = vst.msk [vmem:[#allocation3] sm:$0xff] %vm338_vm0, %v998_v6 }
  0x29   : > { %341 = vst [vmem:[#allocation4] sm:$0xff] %v998_v6 }
  0x2a PF: > { %v629_v7 = vld [vmem:[%s1237_s4] sm:$0xff]  ;;  %v999_v10 = vmov 0   ;;  %v630_v12 = vld [vmem:[%s1237_s4 + $0x8] sm:$0xff]  ;;  %vm529_vm1 = vcmask 261120   ;;  %v379_v19 = vld [vmem:[%s1236_s3 + $0x78] sm:$0xff]  ;;  %v659_v62 = vlaneseq  ;;  %vm696_vm3 = vcmask 7168  }
  0x2b   : > { %v364_v8 = vld [vmem:[%s1236_s3] sm:$0xff]  ;;  %947 = vset.pattern.permute.xlu1 %v999_v10  ;;  %946 = vset.pattern.permute.xlu0 %v999_v10  ;;  %v365_v13 = vld [vmem:[%s1236_s3 + $0x8] sm:$0xff]  ;;  %v378_v20 = vld [vmem:[%s1236_s3 + $0x70] sm:$0xff]  ;;  %p883_p11 = scmp.ne.s32.totalorder %s987_s25, 2 }
  0x2c   : > { %v897_v9 = vld [vmem:[%s297_s20 + $0x8] sm:$0xff]  ;;  %633 = vperm.xlu1 %947, %v629_v7   ;;  %384 = vperm.xlu0 %946, %v364_v8   ;;  %v896_v11 = vld [vmem:[%s297_s20] sm:$0xff]  ;;  %v660_v7 = vshrl.u32 %v659_v62, 7 }
  0x2d   : > { %563 = vmatpush.bf16.msra.mxu0 %v897_v9  ;;  %899 = vmatpush.bf16.msra.mxu3 %v897_v9  ;;  %v887_v14 = vld [vmem:[%s1235_s2] sm:$0xff]  ;;  %v892_v15 = vld [vmem:[%s1235_s2 + $0x28] sm:$0xff]  ;;  %v893_v22 = vld [vmem:[%s1235_s2 + $0x30] sm:$0xff] }
  0x2e   : > { %898 = vmatpush.bf16.msra.mxu2 %v897_v9  ;;  %948 = vset.pattern.permute.xlu2 %v999_v10  ;;  %v891_v16 = vld [vmem:[%s1235_s2 + $0x20] sm:$0xff]  ;;  %v381_v17 = vld [vmem:[%s1236_s3 + $0x88] sm:$0xff]  ;;  %v650_v25 = vld [vmem:[#allocation5] sm:$0x1] }
  0x2f   : > { %v380_v18 = vld [vmem:[%s1236_s3 + $0x80] sm:$0xff]  ;;  %v888_v21 = vld [vmem:[%s1235_s2 + $0x8] sm:$0xff]  ;;  %653 = vperm.xlu2 %948, %v650_v25   ;;  %v375_v26 = vld [vmem:[%s1236_s3 + $0x58] sm:$0xff] }
  0x30   : > { %v377_v23 = vld [vmem:[%s1236_s3 + $0x68] sm:$0xff]  ;;  %v376_v24 = vld [vmem:[%s1236_s3 + $0x60] sm:$0xff]  ;;  %v374_v27 = vld [vmem:[%s1236_s3 + $0x50] sm:$0xff] }
  0x31   : > { %564 = vmatpush.bf16.msra.mxu0 %v896_v11  ;;  %901 = vmatpush.bf16.msra.mxu3 %v896_v11  ;;  %v889_v28 = vld [vmem:[%s1235_s2 + $0x10] sm:$0xff]  ;;  %v894_v29 = vld [vmem:[%s1235_s2 + $0x38] sm:$0xff]  ;;  %v373_v30 = vld [vmem:[%s1236_s3 + $0x48] sm:$0xff] }
  0x32   : > { %900 = vmatpush.bf16.msra.mxu2 %v896_v11  ;;  %v372_v31 = vld [vmem:[%s1236_s3 + $0x40] sm:$0xff]  ;;  %v371_v32 = vld [vmem:[%s1236_s3 + $0x38] sm:$0xff]  ;;  %v366_v36 = vld [vmem:[%s1236_s3 + $0x10] sm:$0xff] }
  0x33   : > { %v890_v33 = vld [vmem:[%s1235_s2 + $0x18] sm:$0xff]  ;;  %v895_v34 = vld [vmem:[%s1235_s2 + $0x40] sm:$0xff] }
  0x34   : > { %638 = vperm.xlu1 %947, %v630_v12   ;;  %389 = vperm.xlu0 %946, %v365_v13   ;;  %v368_v35 = vld [vmem:[%s1236_s3 + $0x20] sm:$0xff] }
  0x35   : > { %871 = vmatmul.msk.bf16.vlgmr.msra.gmra.mxu0 %vm529_vm1, %v887_v14  ;;  %876 = vmatmul.msk.bf16.vlgmr.msra.gmra.mxu3 %vm529_vm1, %v892_v15  ;;  %v949_v8 = vld [vmem:[%s328_s19] ss:$0 sm:$0xff] }
  0x36   : > { %875 = vmatmul.msk.bf16.vlgmr.msra.gmra.mxu2 %vm529_vm1, %v891_v16  ;;  %vm1186_vm2 = vcmp.eq.s32.totalorder %v660_v7, %v949_v8 }
  0x37   : > { %vm880_vm4 = vmpackc.low %vm1186_vm2, %vm1186_vm2 }
  0x3c   : > { %469 = vperm.xlu1 %947, %v381_v17   ;;  %464 = vperm.xlu0 %946, %v380_v18  }
  0x44   : > { %459 = vperm.xlu1 %947, %v379_v19   ;;  %454 = vperm.xlu0 %946, %v378_v20   ;;  %v370_v19 = vld [vmem:[%s1236_s3 + $0x30] sm:$0xff] }
  0x45   : > { %872 = vmatmul.msk.bf16.gmra.mxu0 %vm529_vm1, %v888_v21  ;;  %877 = vmatmul.msk.bf16.gmra.mxu3 %vm529_vm1, %v893_v22 }
  0x4c   : > { %449 = vperm.xlu1 %947, %v377_v23   ;;  %444 = vperm.xlu0 %946, %v376_v24  }
  0x54   : > { %439 = vperm.xlu1 %947, %v375_v26   ;;  %434 = vperm.xlu0 %946, %v374_v27  }
  0x55   : > { %873 = vmatmul.msk.bf16.gmra.mxu0 %vm529_vm1, %v889_v28  ;;  %878 = vmatmul.msk.bf16.gmra.mxu3 %vm529_vm1, %v894_v29 }
  0x5c   : > { %429 = vperm.xlu1 %947, %v373_v30   ;;  %424 = vperm.xlu0 %946, %v372_v31  }
  0x64   : > { %419 = vperm.xlu0 %946, %v371_v32  }
  0x65   : > { %874 = vmatmul.msk.bf16.gmra.mxu0 %vm529_vm1, %v890_v33  ;;  %879 = vmatmul.msk.bf16.gmra.mxu3 %vm529_vm1, %v895_v34 }
  0x6c   : > { %404 = vperm.xlu0 %946, %v368_v35  }
  0x74   : > { %394 = vperm.xlu0 %946, %v366_v36  }
  0x89   : > { %v654_v3 = vpop.permute.xlu2 %653 }
  0x8a   : > { %v656_v9 = vperm.slane %v654_v3, 0 }
  0x9e   : > { %v634_v37 = vpop.permute.xlu1 %633  ;;  %v385_v38 = vpop.permute.xlu0 %384 }
  0xa6   : > { %v639_v39 = vpop.permute.xlu1 %638  ;;  %v390_v40 = vpop.permute.xlu0 %389 }
  0xae   : > { %v470_v41 = vpop.permute.xlu1 %469  ;;  %v465_v42 = vpop.permute.xlu0 %464 }
  0xb2   : > { %v566_v43 = vpop.f32.mrf.mxu0 }
  0xb3   : > { %v567_v46 = vadd.f32 %v566_v43, %v385_v38 }
  0xb5   : > { %v611_v49 = vmax.f32 %v567_v46, 0.0 }
  0xb6   : > { %v460_v44 = vpop.permute.xlu1 %459  ;;  %v455_v45 = vpop.permute.xlu0 %454 }
  0xb7   : > { %v641_v54 = vmul.f32 %v634_v37, %v611_v49 }
  0xb8   : > { %v591_v47 = vpop.f32.mrf.mxu3 }
  0xb9   : > { %v586_v33 = vpop.f32.mrf.mxu2 }
  0xba   : > { %v568_v48 = vpop.f32.mrf.mxu0 }
  0xbb   : > { %v569_v50 = vadd.f32 %v568_v48, %v390_v40 }
  0xbd   : > { %v612_v51 = vmax.f32 %v569_v50, 0.0 }
  0xbe   : > { %v450_v52 = vpop.permute.xlu1 %449  ;;  %v445_v53 = vpop.permute.xlu0 %444 }
  0xbf   : > { %v642_v55 = vmul.f32 %v639_v39, %v612_v51  ;;  %v669_v51 = vld [vmem:[#allocation2] sm:$0xff] }
  0xc0   : > { %v593_v56 = vpop.f32.mrf.mxu3 }
  0xc1   : > { %v643_v57 = vadd.f32 %v642_v55, %v641_v54  ;;  %v588_v38 = vpop.f32.mrf.mxu2 }
  0xc2   : > { %v571_v46 = vpop.f32.mrf.mxu0 }
  0xc3   : > { %v644_v58 = vrot.slane %v643_v57, 4 }
  0xc5   : > { %v645_v59 = vadd.f32 %v644_v58, %v643_v57 }
  0xc6   : > { %v440_v60 = vpop.permute.xlu1 %439  ;;  %v435_v61 = vpop.permute.xlu0 %434 }
  0xc7   : > { %v594_v63 = vadd.f32 %v593_v56, %v440_v60  ;;  %v592_v0 = vadd.f32 %v591_v47, %v435_v61  ;;  %v646_v1 = vrot.slane %v645_v59, 2  ;;  %v369_v60 = vld [vmem:[%s1236_s3 + $0x28] sm:$0xff] }
  0xc8   : > { %v596_v2 = vpop.f32.mrf.mxu3 }
  0xc9   : > { %v622_v4 = vmax.f32 %v594_v63, 0.0  ;;  %v621_v5 = vmax.f32 %v592_v0, 0.0  ;;  %v647_v6 = vadd.f32 %v646_v1, %v645_v59  ;;  %v597_v34 = vadd.f32 %v596_v2, %v445_v53  ;;  %v367_v2 = vld [vmem:[%s1236_s3 + $0x18] sm:$0xff] }
  0xca   : > { %v573_v47 = vpop.f32.mrf.mxu0 }
  0xcb   : > { %v648_v10 = vrot.slane %v647_v6, 1  ;;  %v703_v11 = vpack.c.bf16 %v622_v4, %v621_v5  ;;  %v623_v36 = vmax.f32 %v597_v34, 0.0 }
  0xcd   : > { %v649_v12 = vadd.f32 %v648_v10, %v647_v6 }
  0xce   : > { %v430_v39 = vpop.permute.xlu1 %429  ;;  %v425_v40 = vpop.permute.xlu0 %424 }
  0xcf   : > { %v1190_v14 = vadd.f32 %v656_v9, %v649_v12 }
  0xd0   : > { %v598_v15 = vpop.f32.mrf.mxu3 }
  0xd1   : > { %v666_v16 = vsel %vm1186_vm2, %v1190_v14, -1e+30  ;;  %v599_v31 = vadd.f32 %v598_v15, %v450_v52 }
  0xd2   : > { %667 = vmax.xlane.f32.xlu2 %v666_v16  ;;  %v576_v48 = vpop.f32.mrf.mxu0 }
  0xd3   : > { %v624_v35 = vmax.f32 %v599_v31, 0.0 }
  0xd5   : > { %v704_v37 = vpack.c.bf16 %v624_v35, %v623_v36  ;;  %v720_v36 = vld [vmem:[#allocation4] sm:$0xff] }
  0xd6   : > { %v420_v57 = vpop.permute.xlu0 %419 }
  0xd8   : > { %v601_v17 = vpop.f32.mrf.mxu3 }
  0xd9   : > { %v602_v28 = vadd.f32 %v601_v17, %v455_v45 }
  0xda   : > { %v578_v49 = vpop.f32.mrf.mxu0 }
  0xdb   : > { %v625_v30 = vmax.f32 %v602_v28, 0.0 }
  0xde   : > { %v405_v5 = vpop.permute.xlu0 %404 }
  0xdf   : > { %v577_v9 = vadd.f32 %v576_v48, %v405_v5 }
  0xe0   : > { %v603_v18 = vpop.f32.mrf.mxu3 }
  0xe1   : > { %v604_v26 = vadd.f32 %v603_v18, %v460_v44  ;;  %v615_v16 = vmax.f32 %v577_v9, 0.0 }
  0xe2   : > { %v581_v50 = vpop.f32.mrf.mxu0 }
  0xe3   : > { %v626_v29 = vmax.f32 %v604_v26, 0.0 }
  0xe5   : > { %v705_v32 = vpack.c.bf16 %v626_v29, %v625_v30 }
  0xe6   : > { %v395_v18 = vpop.permute.xlu0 %394 }
  0xe8   : > { %v606_v20 = vpop.f32.mrf.mxu3 }
  0xe9   : > { %v607_v21 = vadd.f32 %v606_v20, %v465_v42  ;;  %v589_v42 = vadd.f32 %v588_v38, %v430_v39 }
  0xea   : > { %414 = vperm.xlu2 %948, %v370_v19   ;;  %v583_v55 = vpop.f32.mrf.mxu0 }
  0xeb   : > { %v627_v24 = vmax.f32 %v607_v21, 0.0  ;;  %v620_v44 = vmax.f32 %v589_v42, 0.0  ;;  %v584_v58 = vadd.f32 %v583_v55, %v420_v57 }
  0xed   : > { %v618_v62 = vmax.f32 %v584_v58, 0.0 }
  0xf0   : > { %v608_v22 = vpop.f32.mrf.mxu3 }
  0xf1   : > { %v609_v23 = vadd.f32 %v608_v22, %v470_v41  ;;  %v587_v41 = vadd.f32 %v586_v33, %v425_v40  ;;  %v572_v22 = vadd.f32 %v571_v46, %v395_v18 }
  0xf3   : > { %v628_v25 = vmax.f32 %v609_v23, 0.0  ;;  %v619_v43 = vmax.f32 %v587_v41, 0.0 }
  0xf5   : > { %v706_v27 = vpack.c.bf16 %v628_v25, %v627_v24  ;;  %v702_v45 = vpack.c.bf16 %v620_v44, %v619_v43 }
  0xf7   : > { %707 = vmatpush.bf16.xpose.msra.mxu1 %v706_v27  ;;  %v613_v27 = vmax.f32 %v572_v22, 0.0 }
  0xff   : > { %708 = vmatpush.bf16.xpose.msra.mxu1 %v705_v32  ;;  %v691_v32 = vld [vmem:[#allocation3] sm:$0xff] }
 0x107   : > { %709 = vmatpush.bf16.xpose.msra.mxu1 %v704_v37 }
 0x10f   : > { %710 = vmatpush.bf16.xpose.msra.mxu1 %v703_v11 }
 0x117   : > { %711 = vmatpush.bf16.xpose.msra.mxu1 %v702_v45 }
 0x145   : > { %v668_v52 = vpop.xlane.xlu2 %667 }
 0x146   : > { %v670_v53 = vmax.f32 %v669_v51, %v668_v52 }
 0x148   : > { %v671_v54 = vsub.f32 %v669_v51, %v670_v53  ;;  %729 = vst.msk [vmem:[#allocation2] sm:$0xff] %vm696_vm3, %v670_v53  ;;  %676 = vperm.xlu1 %947, %v670_v53  }
 0x14a   : > { %v672_v56 = vmul.f32 1.442695, %v671_v54 }
 0x14c   : > { %950 = vpow2.f32 %v672_v56 }
 0x14d   : > { %v415_v59 = vpop.permute.xlu2 %414 }
 0x14e   : > { %v582_v61 = vadd.f32 %v581_v50, %v415_v59 }
 0x150   : > { %v617_v63 = vmax.f32 %v582_v61, 0.0  ;;  %409 = vperm.xlu1 %947, %v369_v60  }
 0x152   : > { %v951_v0 = vpop.eup %950  ;;  %v701_v1 = vpack.c.bf16 %v618_v62, %v617_v63 }
 0x153   : > { %723 = vperm.xlu2 %948, %v951_v0   ;;  %v692_v33 = vmul.f32 %v951_v0, %v691_v32 }
 0x154   : > { %712 = vmatpush.bf16.xpose.msra.mxu1 %v701_v1 }
 0x158   : > { %399 = vperm.xlu1 %947, %v367_v2  }
 0x1ad   : > { %v724_v37 = vpop.permute.xlu2 %723 }
 0x1ae   : > { %v726_v38 = vmul.f32 %v724_v37, %v720_v36 }
 0x1ba   : > { %v677_v3 = vpop.permute.xlu1 %676 }
 0x1bb   : > { %v679_v4 = vsel %vm1186_vm2, %v677_v3, 0.0 }
 0x1bc   : > { %v680_v6 = vrot.slane %v679_v4, 4 }
 0x1be   : > { %v681_v7 = vadd.f32 %v680_v6, %v679_v4 }
 0x1c0   : > { %v682_v8 = vrot.slane %v681_v7, 2 }
 0x1c2   : > { %v683_v10 = vadd.f32 %v682_v8, %v681_v7  ;;  %v410_v11 = vpop.permute.xlu1 %409 }
 0x1c3   : > { %v579_v12 = vadd.f32 %v578_v49, %v410_v11 }
 0x1c4   : > { %v684_v15 = vrot.slane %v683_v10, 1 }
 0x1c5   : > { %v616_v17 = vmax.f32 %v579_v12, 0.0 }
 0x1c6   : > { %v685_v19 = vadd.f32 %v684_v15, %v683_v10 }
 0x1c7   : > { %v700_v20 = vpack.c.bf16 %v616_v17, %v615_v16 }
 0x1c8   : > { %v686_v21 = vsub.f32 %v1190_v14, %v685_v19 }
 0x1c9   : > { %713 = vmatpush.bf16.xpose.msra.mxu1 %v700_v20 }
 0x1ca   : > { %v687_v23 = vmin.f32 %v686_v21, 0.0  ;;  %v400_v24 = vpop.permute.xlu1 %399 }
 0x1cb   : > { %v574_v25 = vadd.f32 %v573_v47, %v400_v24 }
 0x1cc   : > { %v688_v26 = vmul.f32 1.442695, %v687_v23 }
 0x1cd   : > { %v614_v28 = vmax.f32 %v574_v25, 0.0 }
 0x1ce   : > { %952 = vpow2.f32 %v688_v26 }
 0x1cf   : > { %v699_v29 = vpack.c.bf16 %v614_v28, %v613_v27 }
 0x1d1   : > { %714 = vmatpush.bf16.xpose.msra.mxu1 %v699_v29 }
 0x1d4   : > { %v953_v30 = vpop.eup %952 }
 0x1d5   : > { %v690_v31 = vsel %vm1186_vm2, %v953_v30, 0.0  ;;  %v881_v14 = vpack.c.bf16 %v953_v30, %v953_v30 }
 0x1d6   : > { %693 = vadd.xlane.f32.xlu0 %v690_v31 }
 0x1d8   : > { %882 = vmatmul.msk.bf16.vlgmr.msra.gmra.mxu1 %vm880_vm4, %v881_v14 }
 0x249   : > { %v694_v34 = vpop.xlane.xlu0 %693 }
 0x24a   : > { %v695_v35 = vadd.f32 %v694_v34, %v692_v33 }
 0x24c   : > { %697 = vst.msk [vmem:[#allocation3] sm:$0xff] %vm696_vm3, %v695_v35 }
 0x255   : > { %v716_v39 = vpop.f32.mrf.mxu1 }
 0x256   : > { %v727_v40 = vadd.f32 %v726_v38, %v716_v39 }
 0x258   : > { %728 = vst [vmem:[#allocation4] sm:$0xff] %v727_v40 }
 0x259   : > { %733 = sbr.rel (%p883_p11) target bundleno = 734 (0x2de), region = 93 }
 0x25d   : > { %v718_v41 = vpop.f32.mrf.mxu1 }
 0x25e   : > { %v734_v13 = vld [vmem:[#allocation3] sm:$0xff]  ;;  %v1000_v42 = vmov 0  }
 0x25f   : > { %954 = vset.pattern.permute.xlu0 %v1000_v42  ;;  %v735_v43 = vadd.f32 1e-16, %v734_v13  ;;  %v737_v45 = vld [vmem:[#allocation4] sm:$0xff] }
 0x261   : > { %955 = vrcp.f32 %v735_v43 }
 0x267   : > { %v956_v44 = vpop.eup %955 }
 0x268   : > { %740 = vperm.xlu0 %954, %v956_v44  }
 0x2da   : > { %v741_v46 = vpop.permute.xlu0 %740 }
 0x2db   : > { %v743_v47 = vmul.f32 %v741_v46, %v737_v45 }
 0x2dd   : > { %744 = vst [vmem:[%s1239_s6] sm:$0xff] %v743_v47 }
 0x2de PF: > { %s18_s27 = sadd.s32 1, %s995_s27   ;;  %s1242_s23 = smov %s983_s24 }
 0x2df   : > { %p15_p12 = scmp.ge.s32.totalorder %s18_s27, 5   ;;  %s1243_s24 = smov %s1074_s30 }
 0x2e0   : > { %s1244_s25 = smov %s991_s26  ;;  %s1245_s26 = smov %s1247_s5 }
 0x2e1   :  { %17 = sbr.rel (!%p15_p12) target bundleno = 6 (0x6), region = 131 }

</bundles_post_ra>
